<compile_context>
chip_gen: v5e
topology: v5e:2x2
jax: 0.10.0
libtpu: 0.0.40
codegen_flags: <defaults>
</compile_context>

<pallas_src>
import jax
import jax.numpy as jnp
from jax.experimental import pallas as pl
from jax.experimental.pallas import tpu as pltpu


HIDDEN = 64      # logical hidden size (matches the PyTorch module)
LANE = 128       # TPU lane width: N/K dims of the weight tiles pad to this
SUBLANE = 8      # f32 sublane width: batch / feature padding granularity


def _round_up(n, m):
    return (n + m - 1) // m * m


def dqn_kernel(x_ref, w1_ref, w2_ref, w3_ref, bias_ref, out_ref):
    """One batch tile of the 3-layer MLP.

    x_ref:    (tb, s8)     bf16   (s8 = state_size rounded to 8, NOT 128)
    w1_ref:   (s8, 128)    bf16   resident
    w2_ref:   (128, 128)   bf16   resident
    w3_ref:   (128, 128)   bf16   resident
    bias_ref: (8, 128)     f32    resident; rows 0/1/2 = b1/b2/b3
    out_ref:  (tb, 128)    bf16   lane-dense
    """
    # fc1 + ReLU (MXU bf16 matmul, f32 accumulate; epilogue in f32 on the VPU)
    h1 = jnp.dot(x_ref[...], w1_ref[...], preferred_element_type=jnp.float32)
    h1 = jnp.maximum(h1 + bias_ref[0:1, :], 0.0)
    # fc2 + ReLU
    h2 = jnp.dot(h1.astype(jnp.bfloat16), w2_ref[...],
                 preferred_element_type=jnp.float32)
    h2 = jnp.maximum(h2 + bias_ref[1:2, :], 0.0)
    # fc3 (no activation) -> bf16 lane-dense store
    q = jnp.dot(h2.astype(jnp.bfloat16), w3_ref[...],
                preferred_element_type=jnp.float32)
    out_ref[...] = (q + bias_ref[2:3, :]).astype(out_ref.dtype)
    # TODO(synk): fuse the action argmax / Q-select into this kernel for the
    # full RL step; that shrinks the output stream to ~4 B/row.


def prepare_dqn_params(params):
    """One-time padding + bf16 cast of the logical f32 weights.

    Call this at init / after each optimizer step, NOT per forward call.
    """
    w1, b1, w2, b2, w3, b3 = params
    state_size, hidden = w1.shape
    action_size = w3.shape[1]
    assert hidden <= LANE and action_size <= LANE

    s8 = _round_up(state_size, SUBLANE)      # x stays narrow: 8-wide, not 128
    h_pad = _round_up(hidden, LANE)
    a_pad = _round_up(action_size, LANE)
    assert h_pad == a_pad                    # bias rows share one (8, 128) block

    w1p = jnp.pad(w1.astype(jnp.bfloat16),
                  ((0, s8 - state_size), (0, h_pad - hidden)))
    w2p = jnp.pad(w2.astype(jnp.bfloat16),
                  ((0, h_pad - hidden), (0, h_pad - hidden)))
    w3p = jnp.pad(w3.astype(jnp.bfloat16),
                  ((0, h_pad - hidden), (0, a_pad - action_size)))

    biases = jnp.zeros((SUBLANE, h_pad), jnp.float32)
    biases = biases.at[0, :hidden].set(b1.reshape(-1))
    biases = biases.at[1, :hidden].set(b2.reshape(-1))
    biases = biases.at[2, :action_size].set(b3.reshape(-1))

    return dict(w1=w1p, w2=w2p, w3=w3p, biases=biases,
                state_size=state_size, action_size=action_size,
                s_pad=s8, h_pad=h_pad, a_pad=a_pad)


def _choose_batch_tile(batch, max_tile=1024):
    """Pick (tile, padded_batch): tile is a multiple of 8, <= max_tile,
    padding is bounded to < one tile, and when there is enough work we use
    >=2 grid steps so the 'parallel' batch axis can shard across both v7x
    TensorCores (extra step is harmless on single-TC v5e/v6e)."""
    b8 = _round_up(batch, SUBLANE)
    if b8 <= 2 * SUBLANE:                   # tiny batch: single grid step
        return b8, b8
    steps = max(2, pl.cdiv(b8, max_tile))
    tb = min(max_tile, _round_up(pl.cdiv(b8, steps), SUBLANE))
    b_pad = _round_up(b8, tb)
    return tb, b_pad


def dqn_forward(x, prepared, *, max_batch_tile=1024):
    """DQN forward pass using pre-padded bf16 params from prepare_dqn_params."""
    batch, state_size = x.shape
    assert state_size == prepared["state_size"]
    s8 = prepared["s_pad"]
    h_pad = prepared["h_pad"]
    a_pad = prepared["a_pad"]
    action_size = prepared["action_size"]

    tb, b_pad = _choose_batch_tile(batch, max_batch_tile)

    # Narrow input: only pad batch rows to the tile and features to 8.
    xp = jnp.pad(x.astype(jnp.bfloat16),
                 ((0, b_pad - batch), (0, s8 - state_size)))

    resident = lambda i: (0, 0)   # weights/biases stay in VMEM across grid steps

    flops = 2 * b_pad * (s8 * h_pad + h_pad * h_pad + h_pad * a_pad)
    bytes_accessed = (
        xp.size * 2
        + (prepared["w1"].size + prepared["w2"].size + prepared["w3"].size) * 2
        + prepared["biases"].size * 4
        + b_pad * a_pad * 2)

    out_pad = pl.pallas_call(
        dqn_kernel,
        out_shape=jax.ShapeDtypeStruct((b_pad, a_pad), jnp.bfloat16),
        grid=(b_pad // tb,),
        in_specs=[
            pl.BlockSpec((tb, s8), lambda i: (i, 0)),
            pl.BlockSpec((s8, h_pad), resident),
            pl.BlockSpec((h_pad, h_pad), resident),
            pl.BlockSpec((h_pad, a_pad), resident),
            pl.BlockSpec((SUBLANE, h_pad), resident),
        ],
        out_specs=pl.BlockSpec((tb, a_pad), lambda i: (i, 0)),
        compiler_params=pltpu.CompilerParams(
            dimension_semantics=("parallel",)),
        cost_estimate=pl.CostEstimate(
            flops=flops, transcendentals=0, bytes_accessed=bytes_accessed),
    )(xp, prepared["w1"], prepared["w2"], prepared["w3"], prepared["biases"])

    # Slice back to the logical (B, action_size); return f32 Q-values.
    return out_pad[:batch, :action_size].astype(jnp.float32)


def init_dqn_params(key, state_size, action_size, hidden=HIDDEN):
    """Deterministic init mimicking PyTorch nn.Linear default (U[-1/sqrt(fan_in), ...]).
    Weights are stored as (in_features, out_features) so the kernel computes x @ W + b."""
    def linear(k, fan_in, fan_out):
        kw, kb = jax.random.split(k)
        bound = 1.0 / jnp.sqrt(fan_in)
        w = jax.random.uniform(kw, (fan_in, fan_out), jnp.float32, -bound, bound)
        b = jax.random.uniform(kb, (1, fan_out), jnp.float32, -bound, bound)
        return w, b

    k1, k2, k3 = jax.random.split(key, 3)
    w1, b1 = linear(k1, state_size, hidden)
    w2, b2 = linear(k2, hidden, hidden)
    w3, b3 = linear(k3, hidden, action_size)
    return (w1, b1, w2, b2, w3, b3)


def dqn_reference(x, params):
    """Pure-JAX f32 reference for correctness checking."""
    w1, b1, w2, b2, w3, b3 = params
    h1 = jnp.maximum(x @ w1 + b1, 0.0)
    h2 = jnp.maximum(h1 @ w2 + b2, 0.0)
    return h2 @ w3 + b3


if __name__ == "__main__":
    state_size = 8
    action_size = 4
    batch = 8

    key = jax.random.PRNGKey(0)
    kx, kp = jax.random.split(key)

    x = jax.random.normal(kx, (batch, state_size), dtype=jnp.float32)
    params = init_dqn_params(kp, state_size, action_size)

    # One-time param preparation (padding + bf16) outside the forward call.
    prepared = prepare_dqn_params(params)

    out = jax.block_until_ready(dqn_forward(x, prepared))
    ref = dqn_reference(x, params)

    assert out.shape == (batch, action_size)
    # bf16 matmul operands and bf16 output -> relaxed tolerance vs f32 reference.
    assert jnp.allclose(out, ref, atol=5e-2, rtol=5e-2), float(
        jnp.max(jnp.abs(out - ref)))

    print("KERNEL_OK")
</pallas_src>

<mosaic_0001>
module attributes {stable_mosaic.version = 11 : i64} {
  func.func @dqn_kernel(%arg0: i32, %arg1: memref<8x8xbf16, #tpu.memory_space<vmem>>, %arg2: memref<8x128xbf16, #tpu.memory_space<vmem>>, %arg3: memref<128x128xbf16, #tpu.memory_space<vmem>>, %arg4: memref<128x128xbf16, #tpu.memory_space<vmem>>, %arg5: memref<8x128xf32, #tpu.memory_space<vmem>>, %arg6: memref<8x128xbf16, #tpu.memory_space<vmem>>) attributes {dimension_semantics = [#tpu.dimension_semantics<parallel>], iteration_bounds = array<i64: 1>, scalar_prefetch = 0 : i64, scratch_operands = 0 : i64, tpu.core_type = #tpu.core_type<tc>, window_params = [{transform_indices = @transform_0, window_bounds = array<i64: 8, 8>}, {pipeline_mode = #tpu.pipeline_mode<synchronous>, transform_indices = @transform_1, window_bounds = array<i64: 8, 128>}, {pipeline_mode = #tpu.pipeline_mode<synchronous>, transform_indices = @transform_2, window_bounds = array<i64: 128, 128>}, {pipeline_mode = #tpu.pipeline_mode<synchronous>, transform_indices = @transform_3, window_bounds = array<i64: 128, 128>}, {pipeline_mode = #tpu.pipeline_mode<synchronous>, transform_indices = @transform_4, window_bounds = array<i64: 8, 128>}, {transform_indices = @transform_5, window_bounds = array<i64: 8, 128>}]} {
    %c0 = arith.constant 0 : index
    %c0_0 = arith.constant 0 : index
    %0 = vector.load %arg1[%c0, %c0_0] : memref<8x8xbf16, #tpu.memory_space<vmem>>, vector<8x8xbf16>
    %c0_1 = arith.constant 0 : index
    %c0_2 = arith.constant 0 : index
    %1 = vector.load %arg2[%c0_1, %c0_2] : memref<8x128xbf16, #tpu.memory_space<vmem>>, vector<8x128xbf16>
    %cst = arith.constant dense<0.000000e+00> : vector<8x128xf32>
    %2 = tpu.matmul %0, %1, %cst {dimension_numbers = #tpu.dot_dimension_numbers<[1], [0], [0], [1], [0, 0, 1, 1], [], []>} : vector<8x8xbf16>, vector<8x128xbf16>, vector<8x128xf32> -> vector<8x128xf32>
    %c0_3 = arith.constant 0 : index
    %c0_4 = arith.constant 0 : index
    %3 = vector.load %arg5[%c0_3, %c0_4] : memref<8x128xf32, #tpu.memory_space<vmem>>, vector<1x128xf32>
    %4 = vector.broadcast %3 : vector<1x128xf32> to vector<8x128xf32>
    %5 = arith.addf %2, %4 : vector<8x128xf32>
    %cst_5 = arith.constant 0.000000e+00 : f32
    %6 = vector.broadcast %cst_5 : f32 to vector<8x128xf32>
    %7 = arith.maximumf %5, %6 : vector<8x128xf32>
    %8 = arith.truncf %7 : vector<8x128xf32> to vector<8x128xbf16>
    %c0_6 = arith.constant 0 : index
    %c0_7 = arith.constant 0 : index
    %9 = vector.load %arg3[%c0_6, %c0_7] : memref<128x128xbf16, #tpu.memory_space<vmem>>, vector<128x128xbf16>
    %cst_8 = arith.constant dense<0.000000e+00> : vector<8x128xf32>
    %10 = tpu.matmul %8, %9, %cst_8 {dimension_numbers = #tpu.dot_dimension_numbers<[1], [0], [0], [1], [0, 0, 1, 1], [], []>} : vector<8x128xbf16>, vector<128x128xbf16>, vector<8x128xf32> -> vector<8x128xf32>
    %c1 = arith.constant 1 : index
    %c0_9 = arith.constant 0 : index
    %11 = vector.load %arg5[%c1, %c0_9] : memref<8x128xf32, #tpu.memory_space<vmem>>, vector<1x128xf32>
    %12 = vector.broadcast %11 : vector<1x128xf32> to vector<8x128xf32>
    %13 = arith.addf %10, %12 : vector<8x128xf32>
    %cst_10 = arith.constant 0.000000e+00 : f32
    %14 = vector.broadcast %cst_10 : f32 to vector<8x128xf32>
    %15 = arith.maximumf %13, %14 : vector<8x128xf32>
    %16 = arith.truncf %15 : vector<8x128xf32> to vector<8x128xbf16>
    %c0_11 = arith.constant 0 : index
    %c0_12 = arith.constant 0 : index
    %17 = vector.load %arg4[%c0_11, %c0_12] : memref<128x128xbf16, #tpu.memory_space<vmem>>, vector<128x128xbf16>
    %cst_13 = arith.constant dense<0.000000e+00> : vector<8x128xf32>
    %18 = tpu.matmul %16, %17, %cst_13 {dimension_numbers = #tpu.dot_dimension_numbers<[1], [0], [0], [1], [0, 0, 1, 1], [], []>} : vector<8x128xbf16>, vector<128x128xbf16>, vector<8x128xf32> -> vector<8x128xf32>
    %c2 = arith.constant 2 : index
    %c0_14 = arith.constant 0 : index
    %19 = vector.load %arg5[%c2, %c0_14] : memref<8x128xf32, #tpu.memory_space<vmem>>, vector<1x128xf32>
    %20 = vector.broadcast %19 : vector<1x128xf32> to vector<8x128xf32>
    %21 = arith.addf %18, %20 : vector<8x128xf32>
    %22 = arith.truncf %21 : vector<8x128xf32> to vector<8x128xbf16>
    %c0_15 = arith.constant 0 : index
    %c0_16 = arith.constant 0 : index
    %23 = vector.load %arg6[%c0_15, %c0_16] : memref<8x128xbf16, #tpu.memory_space<vmem>>, vector<8x128xbf16>
    tpu.vector_store %arg6[%c0_15, %c0_16], %22 {strides = array<i32>} : memref<8x128xbf16, #tpu.memory_space<vmem>>, vector<8x128xbf16>,
    return
  }
  func.func @transform_0(%arg0: i32) -> (i32, i32) {
    %c0_i32 = arith.constant 0 : i32
    %c0_i32_0 = arith.constant 0 : i32
    return %arg0, %c0_i32 : i32, i32
  }
  func.func @transform_1(%arg0: i32) -> (i32, i32) {
    %c0_i32 = arith.constant 0 : i32
    %c0_i32_0 = arith.constant 0 : i32
    %c0_i32_1 = arith.constant 0 : i32
    return %c0_i32, %c0_i32_0 : i32, i32
  }
  func.func @transform_2(%arg0: i32) -> (i32, i32) {
    %c0_i32 = arith.constant 0 : i32
    %c0_i32_0 = arith.constant 0 : i32
    %c0_i32_1 = arith.constant 0 : i32
    return %c0_i32, %c0_i32_0 : i32, i32
  }
  func.func @transform_3(%arg0: i32) -> (i32, i32) {
    %c0_i32 = arith.constant 0 : i32
    %c0_i32_0 = arith.constant 0 : i32
    %c0_i32_1 = arith.constant 0 : i32
    return %c0_i32, %c0_i32_0 : i32, i32
  }
  func.func @transform_4(%arg0: i32) -> (i32, i32) {
    %c0_i32 = arith.constant 0 : i32
    %c0_i32_0 = arith.constant 0 : i32
    %c0_i32_1 = arith.constant 0 : i32
    return %c0_i32, %c0_i32_0 : i32, i32
  }
  func.func @transform_5(%arg0: i32) -> (i32, i32) {
    %c0_i32 = arith.constant 0 : i32
    %c0_i32_0 = arith.constant 0 : i32
    return %arg0, %c0_i32 : i32, i32
  }
}

</mosaic_0001>

<bundles_post_ra>
// kernel: tpu_custom_call.1
= control target key start
LH: loop header
LB: loop body
LE: loop exit
PB: predicated region body
PF: predicated region fallthrough
CT: control target
= control target key end

     0   :  { %10 = vsyncpa [#allocation3], 0  ;;  %s602_s0 = inlined_call_operand.hbm [shape: bf16[8,8], index: 0, kind: input, shape index: {}]   ;;  %s603_s1 = inlined_call_operand.hbm [shape: bf16[8,128], index: 1, kind: input, shape index: {}]   ;;  %s604_s2 = inlined_call_operand.hbm [shape: bf16[128,128], index: 2, kind: input, shape index: {}]   ;;  %s605_s3 = inlined_call_operand.hbm [shape: bf16[128,128], index: 3, kind: input, shape index: {}]   ;;  %s606_s4 = inlined_call_operand.hbm [shape: f32[8,128], index: 4, kind: input, shape index: {}]   ;;  %s607_s5 = inlined_call_operand.hbm [shape: bf16[8,128], index: 5, kind: output, shape index: {}]  }
   0x1   :  { %11 = vsyncpa [#allocation6], 0 }
   0x2   :  { %12 = vsyncpa [#allocation9], 0  ;;  %s30_s20 = sshll.u32 %s603_s1, 4  ;;  %s31_s20 = int_to_ptr.hbm [resolvable:$true] %s30_s20 }
   0x3   :  { %13 = vsyncpa [#allocation4], 0  ;;  %s546_s21 = smov [#allocation5]   ;;  %s53_s25 = sshll.u32 %s605_s3, 4  ;;  %s54_s25 = int_to_ptr.hbm [resolvable:$true] %s53_s25 }
   0x4   :  { %s32_s22 = sshll.u32 %s546_s21, 4  ;;  %s547_s26 = smov [#allocation8]   ;;  %s33_s22 = int_to_ptr.vmem [resolvable:$true] %s32_s22 }
   0x5   :  { %35 = dma.hbm_to_vmem [thread:$0]  %s31_s20, 64, %s33_s22, [#allocation6]  }
   0x6   :  { %s55_s27 = sshll.u32 %s547_s26, 4  ;;  %s19_s30 = sshll.u32 %s602_s0, 4  ;;  %s56_s27 = int_to_ptr.vmem [resolvable:$true] %s55_s27  ;;  %s20_s30 = int_to_ptr.hbm [resolvable:$true] %s19_s30 }
   0x7   :  { %s548_s1 = smov 64   ;;  %s549_s6 = smov 4  }
   0x8   :  { %61 = dma.hbm_to_vmem [thread:$0]  %s54_s25, 1024, %s56_s27, [#allocation9], %s548_s1, %s548_s1, %s549_s6  }
   0x9   :  { %s40_s9 = sshll.u32 %s604_s2, 4  ;;  %s550_s10 = smov [#allocation2]   ;;  %s41_s9 = int_to_ptr.hbm [resolvable:$true] %s40_s9 }
   0xa   :  { %s21_s11 = sshll.u32 %s550_s10, 4  ;;  %s551_s3 = smov [#allocation7]   ;;  %s22_s11 = int_to_ptr.vmem [resolvable:$true] %s21_s11 }
   0xb   :  { %24 = dma.hbm_to_vmem [thread:$0]  %s20_s30, 64, %s22_s11, [#allocation3]  }
   0xc   :  { %s42_s12 = sshll.u32 %s551_s3, 4  ;;  %s67_s0 = sshll.u32 %s606_s4, 4  ;;  %s43_s12 = int_to_ptr.vmem [resolvable:$true] %s42_s12  ;;  %s68_s0 = int_to_ptr.hbm [resolvable:$true] %s67_s0 }
   0xd   :  { %48 = dma.hbm_to_vmem [thread:$0]  %s41_s9, 1024, %s43_s12, [#allocation6], %s548_s1, %s548_s1, %s549_s6  }
   0xe   :  { %s552_s15 = smov [#allocation10]  }
   0xf   :  { %s69_s16 = sshll.u32 %s552_s15, 4  ;;  %s70_s16 = int_to_ptr.vmem [resolvable:$true] %s69_s16 }
  0x10   :  { %72 = dma.hbm_to_vmem [thread:$0]  %s68_s0, 128, %s70_s16, [#allocation9]  }
  0x11   :  { %538 = dma.done.wait [#allocation3], 64  }
  0x12   :  { %539 = vsyncadd [#allocation3], 4294967232 }
  0x13   :  { %540 = dma.done.wait [#allocation6], 1088  }
  0x14   :  { %541 = vsyncadd [#allocation6], 4294966208 }
  0x15   :  { %542 = dma.done.wait [#allocation9], 1152  }
  0x16   :  { %543 = vsyncadd [#allocation9], 4294966144  ;;  %vm102_vm0 = vcmask 1043456   ;;  %v95_v0 = vld [vmem:[#allocation5] sm:$0xf]  ;;  %vm98_vm1 = vcmask 64512  }
  0x17   :  { %v374_v1 = vld [vmem:[#allocation7 + $0x38] sm:$0xff]  ;;  %v104_v2 = vsel %vm102_vm0, %v95_v0, 0  ;;  %v373_v4 = vld [vmem:[#allocation7 + $0x30] sm:$0xff]  ;;  %v372_v5 = vld [vmem:[#allocation7 + $0x28] sm:$0xff]  ;;  %s553_s2 = smov [#allocation11]   ;;  %s290_s19 = sshll.u32 %s607_s5, 4  ;;  %s291_s19 = int_to_ptr.hbm [resolvable:$true] %s290_s19 }
  0x18   :  { %113 = vmatpush.bf16.msra.mxu0 %v104_v2  ;;  %v94_v3 = vld [vmem:[#allocation2] sm:$0xf]  ;;  %187 = vmatpush.bf16.msra.mxu1 %v374_v1  ;;  %v371_v6 = vld [vmem:[#allocation7 + $0x20] sm:$0xff]  ;;  %v369_v8 = vld [vmem:[#allocation7 + $0x10] sm:$0xff]  ;;  %s288_s4 = sshll.u32 %s553_s2, 4  ;;  %s289_s4 = int_to_ptr.vmem [resolvable:$true] %s288_s4 }
  0x19   :  { %v370_v7 = vld [vmem:[#allocation7 + $0x18] sm:$0xff]  ;;  %v368_v9 = vld [vmem:[#allocation7 + $0x8] sm:$0xff]  ;;  %v367_v10 = vld [vmem:[#allocation7] sm:$0xff] }
  0x1a   :  { %v382_v11 = vld [vmem:[#allocation8 + $0x38] sm:$0xff]  ;;  %v381_v12 = vld [vmem:[#allocation8 + $0x30] sm:$0xff]  ;;  %v380_v13 = vld [vmem:[#allocation8 + $0x28] sm:$0xff] }
  0x1b   :  { %302 = vmatmul.msk.bf16.vlgmr.msra.gmra.mxu0 %vm98_vm1, %v94_v3  ;;  %268 = vmatpush.bf16.msra.mxu2 %v382_v11  ;;  %v379_v14 = vld [vmem:[#allocation8 + $0x20] sm:$0xff]  ;;  %v378_v15 = vld [vmem:[#allocation8 + $0x18] sm:$0xff]  ;;  %v377_v16 = vld [vmem:[#allocation8 + $0x10] sm:$0xff] }
  0x1c   :  { %188 = vmatpush.bf16.msra.mxu1 %v373_v4  ;;  %v391_v17 = vld [vmem:[#allocation10] ss:$0 sm:$0xff]  ;;  %v376_v23 = vld [vmem:[#allocation8 + $0x8] sm:$0xff]  ;;  %v392_v25 = vld [vmem:[#allocation10 + $0x1] ss:$0 sm:$0xff] }
  0x1d   :  { %v375_v24 = vld [vmem:[#allocation8] sm:$0xff] }
  0x1e   :  { %v393_v31 = vld [vmem:[#allocation10 + $0x2] ss:$0 sm:$0xff] }
  0x1f   :  { %269 = vmatpush.bf16.msra.mxu2 %v381_v12 }
  0x20   :  { %189 = vmatpush.bf16.msra.mxu1 %v372_v5 }
  0x23   :  { %270 = vmatpush.bf16.msra.mxu2 %v380_v13 }
  0x24   :  { %190 = vmatpush.bf16.msra.mxu1 %v371_v6 }
  0x27   :  { %271 = vmatpush.bf16.msra.mxu2 %v379_v14 }
  0x28   :  { %191 = vmatpush.bf16.msra.mxu1 %v370_v7 }
  0x2b   :  { %272 = vmatpush.bf16.msra.mxu2 %v378_v15 }
  0x2c   :  { %192 = vmatpush.bf16.msra.mxu1 %v369_v8 }
  0x2f   :  { %273 = vmatpush.bf16.msra.mxu2 %v377_v16 }
  0x30   :  { %193 = vmatpush.bf16.msra.mxu1 %v368_v9 }
  0x33   :  { %274 = vmatpush.bf16.msra.mxu2 %v376_v23 }
  0x34   :  { %194 = vmatpush.bf16.msra.mxu1 %v367_v10 }
  0x37   :  { %275 = vmatpush.bf16.msra.mxu2 %v375_v24 }
  0x98   :  { %v115_v18 = vpop.f32.mrf.mxu0 }
  0x99   :  { %v116_v19 = vadd.f32 %v391_v17, %v115_v18 }
  0x9b   :  { %v119_v20 = vmax.f32 %v116_v19, 0.0 }
  0x9d   :  { %v120_v21 = vpack.c.bf16 %v119_v20, %v119_v20 }
  0x9f   :  { %195 = vmatmul.bf16.vlgmr.msra.gmra.mxu1 %v120_v21 }
  0xa0   :  { %v117_v22 = vpop.f32.mrf.mxu0 }
 0x11c   :  { %v196_v26 = vpop.f32.mrf.mxu1 }
 0x11d   :  { %v197_v27 = vadd.f32 %v392_v25, %v196_v26 }
 0x11f   :  { %v200_v28 = vmax.f32 %v197_v27, 0.0 }
 0x121   :  { %v201_v29 = vpack.c.bf16 %v200_v28, %v200_v28 }
 0x123   :  { %276 = vmatmul.bf16.vlgmr.msra.gmra.mxu2 %v201_v29 }
 0x124   :  { %v198_v30 = vpop.f32.mrf.mxu1 }
 0x1a6   :  { %v277_v32 = vpop.f32.mrf.mxu2 }
 0x1a7   :  { %v278_v33 = vadd.f32 %v393_v31, %v277_v32 }
 0x1a9   :  { %v281_v34 = vpack.c.bf16 %v278_v33, %v278_v33 }
 0x1ab   :  { %282 = vst [vmem:[#allocation11] sm:$0xf] %v281_v34 }
 0x1ac   :  { %293 = dma.vmem_to_hbm [thread:$0]  %s289_s4, 64, %s291_s19, [#allocation4]  }
 0x1ae   :  { %v279_v35 = vpop.f32.mrf.mxu2 }
 0x1af   :  { %544 = dma.done.wait [#allocation4], 64  }
 0x1b0   :  { %545 = vsyncadd [#allocation4], 4294967232 }
 0x1b1   :  { %298 = vsyncpa [#allocation3], 1 }
 0x1b2   :  { %299 = vsyncpa [#allocation6], 1 }
 0x1b3   :  { %300 = vsyncpa [#allocation9], 1 }
 0x1b4   :  { %301 = vsyncpa [#allocation4], 1 }

</bundles_post_ra>
